<compile_context>
chip_gen: v7x
topology: tpu7x:2x2x1
jax: 0.10.0
libtpu: 0.0.40
codegen_flags: <defaults>
</compile_context>

<pallas_src>
import functools
import math

import jax
import jax.numpy as jnp
from jax import lax
from jax.experimental import pallas as pl
from jax.experimental.pallas import tpu as pltpu

# ---- small demo config, consistent with the module ----
B = 2          # batch
S = 8          # sequence length
N_UNITS = 32   # n_units / d_model
N_HEADS = 4
D_K = N_UNITS // N_HEADS


# ----------------------------------------------------------------------------
# Pallas kernel: one (batch, q-block, head, kv-block) grid step.
#   - per-head Q projection + flash state init at kv-block 0
#   - K/V projections + online-softmax update every kv-block
#   - per-head output-projection accumulation into o_ref at the last kv-block
# ----------------------------------------------------------------------------
def mha_kernel(xq_ref, xk_ref, xv_ref, bias_ref,
               wq_ref, wk_ref, wv_ref, bq_ref, bk_ref, bv_ref,
               wo_ref, bo_ref,
               o_ref,
               q_sc, m_sc, l_sc, acc_sc, *, inv_sqrt_dk):
    hi = pl.program_id(2)
    ki = pl.program_id(3)
    nk = pl.num_programs(3)
    f32 = jnp.float32
    bf16 = jnp.bfloat16

    # ---- output-block init (o_ref is VMEM-resident across the h / kv axes) ----
    @pl.when((hi == 0) & (ki == 0))
    def _init_out():
        o_ref[...] = jnp.broadcast_to(bo_ref[...], o_ref.shape).astype(o_ref.dtype)

    # ---- per-head Q projection (scaled) + flash-softmax state init ----
    @pl.when(ki == 0)
    def _init_head():
        q = jnp.dot(xq_ref[...], wq_ref[...], preferred_element_type=f32)   # (tq, d_k)
        q = (q + bq_ref[...]) * inv_sqrt_dk
        q_sc[...] = q.astype(bf16)
        m_sc[...] = jnp.full(m_sc.shape, -jnp.inf, m_sc.dtype)
        l_sc[...] = jnp.zeros(l_sc.shape, l_sc.dtype)
        acc_sc[...] = jnp.zeros(acc_sc.shape, acc_sc.dtype)

    # ---- K/V projections for this head / kv-block (bf16 MXU, f32 accumulate) ----
    k = (jnp.dot(xk_ref[...], wk_ref[...], preferred_element_type=f32)
         + bk_ref[...]).astype(bf16)                                         # (tk, d_k)
    v = (jnp.dot(xv_ref[...], wv_ref[...], preferred_element_type=f32)
         + bv_ref[...]).astype(bf16)                                         # (tk, d_k)

    # ---- scores (Q already scaled by 1/sqrt(d_k)); additive mask bias ----
    s = lax.dot_general(q_sc[...], k, (((1,), (1,)), ((), ())),
                        preferred_element_type=f32)                          # (tq, tk)
    s = s + bias_ref[...]                                                    # (1, tk) bcast

    # ---- online softmax update (f32) ----
    m_prev = m_sc[...]
    m_new = jnp.maximum(m_prev, jnp.max(s, axis=-1, keepdims=True))
    alpha = jnp.exp(m_prev - m_new)
    p = jnp.exp(s - m_new)
    l_sc[...] = alpha * l_sc[...] + jnp.sum(p, axis=-1, keepdims=True)
    acc_sc[...] = alpha * acc_sc[...] + jnp.dot(p.astype(bf16), v,
                                                preferred_element_type=f32)  # (tq, d_k)
    m_sc[...] = m_new
    # TODO(synk): nn.Dropout on the attention weights is eval-mode identity; omitted.

    # ---- finalize head: normalize and fold the head-concat into a per-head
    #      Wo slice, accumulated into the lane-dense (tq, D) output block ----
    @pl.when(ki == nk - 1)
    def _finalize_head():
        ctx = acc_sc[...] * pl.reciprocal(l_sc[...], approx=True)            # (tq, d_k)
        o_ref[...] += jnp.dot(ctx.astype(bf16), wo_ref[...],
                              preferred_element_type=f32)                    # (tq, D)


# ----------------------------------------------------------------------------
# wrapper: head-major weight layout (free XLA glue) + gridded pallas_call
# ----------------------------------------------------------------------------
def multi_headed_attention(query, key, value, mask, params, *, n_heads,
                           block_q=None, block_k=None):
    """Eval-mode forward equivalent to the PyTorch MultiHeadedAttention."""
    b, s, d = query.shape
    d_k = d // n_heads
    tq = block_q if block_q is not None else s
    tk = block_k if block_k is not None else s
    assert s % tq == 0 and s % tk == 0

    f32, bf16 = jnp.float32, jnp.bfloat16

    # bf16 activations: halves DMA bytes, hits the MXU bf16 fast path.
    xq = query.astype(bf16)
    xk = key.astype(bf16)
    xv = value.astype(bf16)

    # torch nn.Linear stores W as (out, in); y = x @ W.T + b.
    # Head-major layout so Q/K/V come out per-head with no in-kernel slicing.
    def w_heads(w):   # (D, D) -> (H, D, d_k)
        return w.T.reshape(d, n_heads, d_k).transpose(1, 0, 2).astype(bf16)

    def b_heads(bvec):   # (D,) -> (H, 1, d_k), kept f32 (added to f32 accumulators)
        return bvec.reshape(n_heads, 1, d_k).astype(f32)

    wq_h, wk_h, wv_h = w_heads(params["wq"]), w_heads(params["wk"]), w_heads(params["wv"])
    bq_h, bk_h, bv_h = b_heads(params["bq"]), b_heads(params["bk"]), b_heads(params["bv"])
    wo_h = params["wo"].T.reshape(n_heads, d_k, d).astype(bf16)   # (H, d_k, D), no per-batch dup
    bo = params["bo"].reshape(1, d).astype(f32)

    # Hoisted additive mask bias (f32), per batch over keys.
    if mask is None:
        bias = jnp.zeros((b, 1, s), f32)
    else:
        bias = jnp.where(mask == 0, jnp.float32(-1e9), jnp.float32(0.0)).astype(f32)

    grid = (b, s // tq, n_heads, s // tk)

    in_specs = [
        pl.BlockSpec((None, tq, d),   lambda bi, qi, hi, ki: (bi, qi, 0)),   # xq
        pl.BlockSpec((None, tk, d),   lambda bi, qi, hi, ki: (bi, ki, 0)),   # xk
        pl.BlockSpec((None, tk, d),   lambda bi, qi, hi, ki: (bi, ki, 0)),   # xv
        pl.BlockSpec((None, 1, tk),   lambda bi, qi, hi, ki: (bi, 0, ki)),   # mask bias
        pl.BlockSpec((None, d, d_k),  lambda bi, qi, hi, ki: (hi, 0, 0)),    # wq_h
        pl.BlockSpec((None, d, d_k),  lambda bi, qi, hi, ki: (hi, 0, 0)),    # wk_h
        pl.BlockSpec((None, d, d_k),  lambda bi, qi, hi, ki: (hi, 0, 0)),    # wv_h
        pl.BlockSpec((None, 1, d_k),  lambda bi, qi, hi, ki: (hi, 0, 0)),    # bq_h
        pl.BlockSpec((None, 1, d_k),  lambda bi, qi, hi, ki: (hi, 0, 0)),    # bk_h
        pl.BlockSpec((None, 1, d_k),  lambda bi, qi, hi, ki: (hi, 0, 0)),    # bv_h
        pl.BlockSpec((None, d_k, d),  lambda bi, qi, hi, ki: (hi, 0, 0)),    # wo_h
        pl.BlockSpec((1, d),          lambda bi, qi, hi, ki: (0, 0)),        # bo
    ]
    out_spec = pl.BlockSpec((None, tq, d), lambda bi, qi, hi, ki: (bi, qi, 0))

    scratch_shapes = [
        pltpu.VMEM((tq, d_k), bf16),   # scaled per-head Q tile
        pltpu.VMEM((tq, 1), f32),      # running max m
        pltpu.VMEM((tq, 1), f32),      # running denom l
        pltpu.VMEM((tq, d_k), f32),    # running context accumulator
    ]

    kernel = functools.partial(mha_kernel, inv_sqrt_dk=float(1.0 / math.sqrt(d_k)))

    return pl.pallas_call(
        kernel,
        out_shape=jax.ShapeDtypeStruct((b, s, d), f32),
        grid_spec=pltpu.PrefetchScalarGridSpec(
            num_scalar_prefetch=0,
            grid=grid,
            in_specs=in_specs,
            out_specs=out_spec,
            scratch_shapes=scratch_shapes),
        compiler_params=pltpu.CompilerParams(
            dimension_semantics=("parallel", "parallel", "arbitrary", "arbitrary")),
    )(xq, xk, xv, bias, wq_h, wk_h, wv_h, bq_h, bk_h, bv_h, wo_h, bo)


mha = jax.jit(multi_headed_attention,
              static_argnames=("n_heads", "block_q", "block_k"))


# ----------------------------------------------------------------------------
# pure-JAX f32 reference (mirrors the PyTorch forward) for a correctness check
# ----------------------------------------------------------------------------
def mha_reference(query, key, value, mask, params, n_heads):
    b, s, d = query.shape
    d_k = d // n_heads

    def lin(x, w, bias):
        return x @ w.T + bias

    def heads(t):
        return t.reshape(b, s, n_heads, d_k).transpose(0, 2, 1, 3)

    Q = heads(lin(query, params["wq"], params["bq"]))
    K = heads(lin(key, params["wk"], params["bk"]))
    V = heads(lin(value, params["wv"], params["bv"]))
    scores = jnp.einsum("bhqd,bhkd->bhqk", Q, K) / jnp.sqrt(jnp.float32(d_k))
    if mask is not None:
        scores = jnp.where(mask[:, None, :, :] == 0, jnp.float32(-1e9), scores)
    A = jax.nn.softmax(scores, axis=-1)
    ctx = jnp.einsum("bhqk,bhkd->bhqd", A, V)
    ctx = ctx.transpose(0, 2, 1, 3).reshape(b, s, d)
    return ctx @ params["wo"].T + params["bo"]


# ----------------------------------------------------------------------------
if __name__ == "__main__":
    root = jax.random.PRNGKey(0)
    ks = jax.random.split(root, 11)

    def lin_params(kw, kb, din, dout):
        # torch nn.Linear stores W as (out, in); keep that layout here.
        w = jax.random.normal(kw, (dout, din), jnp.float32) * 0.1
        bias = jax.random.normal(kb, (dout,), jnp.float32) * 0.1
        return w, bias

    wq, bq = lin_params(ks[0], ks[1], N_UNITS, N_UNITS)
    wk, bk = lin_params(ks[2], ks[3], N_UNITS, N_UNITS)
    wv, bv = lin_params(ks[4], ks[5], N_UNITS, N_UNITS)
    wo, bo = lin_params(ks[6], ks[7], N_UNITS, N_UNITS)
    params = dict(wq=wq, bq=bq, wk=wk, bk=bk, wv=wv, bv=bv, wo=wo, bo=bo)

    query = jax.random.normal(ks[8], (B, S, N_UNITS), jnp.float32)
    key_in = jax.random.normal(ks[9], (B, S, N_UNITS), jnp.float32)
    value = jax.random.normal(ks[10], (B, S, N_UNITS), jnp.float32)
    mask = jnp.ones((B, 1, S), jnp.float32).at[1, 0, S - 1].set(0.0)  # mask last key of batch 1

    out = mha(query, key_in, value, mask, params, n_heads=N_HEADS)
    out = jax.block_until_ready(out)

    ref = mha_reference(query, key_in, value, mask, params, N_HEADS)
    assert out.shape == (B, S, N_UNITS)
    max_err = float(jnp.max(jnp.abs(out - ref)))
    # bf16 matmul operands (f32 accumulation) + approximate reciprocal in the
    # softmax denominator -> compare against the f32 reference at bf16-level tol.
    assert jnp.allclose(out, ref, rtol=2e-2, atol=2e-2), max_err

    print("KERNEL_OK")
</pallas_src>

<mosaic_0001>
module attributes {stable_mosaic.version = 11 : i64} {
  func.func @mha_kernel(%arg0: i32, %arg1: i32, %arg2: i32, %arg3: i32, %arg4: memref<1x8x32xbf16, #tpu.memory_space<vmem>>, %arg5: memref<1x8x32xbf16, #tpu.memory_space<vmem>>, %arg6: memref<1x8x32xbf16, #tpu.memory_space<vmem>>, %arg7: memref<1x1x8xf32, #tpu.memory_space<vmem>>, %arg8: memref<1x32x8xbf16, #tpu.memory_space<vmem>>, %arg9: memref<1x32x8xbf16, #tpu.memory_space<vmem>>, %arg10: memref<1x32x8xbf16, #tpu.memory_space<vmem>>, %arg11: memref<1x1x8xf32, #tpu.memory_space<vmem>>, %arg12: memref<1x1x8xf32, #tpu.memory_space<vmem>>, %arg13: memref<1x1x8xf32, #tpu.memory_space<vmem>>, %arg14: memref<1x8x32xbf16, #tpu.memory_space<vmem>>, %arg15: memref<1x32xf32, #tpu.memory_space<vmem>>, %arg16: memref<1x8x32xf32, #tpu.memory_space<vmem>>, %arg17: memref<8x8xbf16, #tpu.memory_space<vmem>>, %arg18: memref<8x1xf32, #tpu.memory_space<vmem>>, %arg19: memref<8x1xf32, #tpu.memory_space<vmem>>, %arg20: memref<8x8xf32, #tpu.memory_space<vmem>>) attributes {dimension_semantics = [#tpu.dimension_semantics<parallel>, #tpu.dimension_semantics<parallel>, #tpu.dimension_semantics<arbitrary>, #tpu.dimension_semantics<arbitrary>], iteration_bounds = array<i64: 2, 1, 4, 1>, scalar_prefetch = 0 : i64, scratch_operands = 4 : i64, tpu.core_type = #tpu.core_type<tc>, window_params = [{transform_indices = @transform_0, window_bounds = array<i64: 1, 8, 32>}, {transform_indices = @transform_1, window_bounds = array<i64: 1, 8, 32>}, {transform_indices = @transform_2, window_bounds = array<i64: 1, 8, 32>}, {transform_indices = @transform_3, window_bounds = array<i64: 1, 1, 8>}, {transform_indices = @transform_4, window_bounds = array<i64: 1, 32, 8>}, {transform_indices = @transform_5, window_bounds = array<i64: 1, 32, 8>}, {transform_indices = @transform_6, window_bounds = array<i64: 1, 32, 8>}, {transform_indices = @transform_7, window_bounds = array<i64: 1, 1, 8>}, {transform_indices = @transform_8, window_bounds = array<i64: 1, 1, 8>}, {transform_indices = @transform_9, window_bounds = array<i64: 1, 1, 8>}, {transform_indices = @transform_10, window_bounds = array<i64: 1, 8, 32>}, {pipeline_mode = #tpu.pipeline_mode<synchronous>, transform_indices = @transform_11, window_bounds = array<i64: 1, 32>}, {transform_indices = @transform_12, window_bounds = array<i64: 1, 8, 32>}]} {
    %c0_i32 = arith.constant 0 : i32
    %0 = arith.cmpi eq, %arg2, %c0_i32 : i32
    %c0_i32_0 = arith.constant 0 : i32
    %1 = arith.cmpi eq, %arg3, %c0_i32_0 : i32
    %2 = arith.andi %0, %1 : i1
    %3 = arith.extui %2 : i1 to i32
    %c0_i32_1 = arith.constant 0 : i32
    %4 = arith.cmpi ne, %3, %c0_i32_1 : i32
    scf.if %4 {
      %c0_45 = arith.constant 0 : index
      %c0_46 = arith.constant 0 : index
      %60 = vector.load %arg15[%c0_45, %c0_46] : memref<1x32xf32, #tpu.memory_space<vmem>>, vector<1x32xf32>
      %61 = vector.shape_cast %60 : vector<1x32xf32> to vector<1x32xf32>
      %62 = vector.broadcast %61 : vector<1x32xf32> to vector<8x32xf32>
      %c0_47 = arith.constant 0 : index
      %c0_48 = arith.constant 0 : index
      %c0_49 = arith.constant 0 : index
      %63 = vector.load %arg16[%c0_47, %c0_48, %c0_49] : memref<1x8x32xf32, #tpu.memory_space<vmem>>, vector<1x8x32xf32>
      %64 = vector.shape_cast %63 : vector<1x8x32xf32> to vector<8x32xf32>
      %65 = vector.shape_cast %62 : vector<8x32xf32> to vector<1x8x32xf32>
      tpu.vector_store %arg16[%c0_47, %c0_48, %c0_49], %65 {strides = array<i32>} : memref<1x8x32xf32, #tpu.memory_space<vmem>>, vector<1x8x32xf32>,
    } else {
    }
    %c0_i32_2 = arith.constant 0 : i32
    %5 = arith.cmpi eq, %arg3, %c0_i32_2 : i32
    %6 = arith.extui %5 : i1 to i32
    %c0_i32_3 = arith.constant 0 : i32
    %7 = arith.cmpi ne, %6, %c0_i32_3 : i32
    scf.if %7 {
      %c0_45 = arith.constant 0 : index
      %c0_46 = arith.constant 0 : index
      %c0_47 = arith.constant 0 : index
      %60 = vector.load %arg4[%c0_45, %c0_46, %c0_47] : memref<1x8x32xbf16, #tpu.memory_space<vmem>>, vector<1x8x32xbf16>
      %61 = vector.shape_cast %60 : vector<1x8x32xbf16> to vector<8x32xbf16>
      %c0_48 = arith.constant 0 : index
      %c0_49 = arith.constant 0 : index
      %c0_50 = arith.constant 0 : index
      %62 = vector.load %arg8[%c0_48, %c0_49, %c0_50] : memref<1x32x8xbf16, #tpu.memory_space<vmem>>, vector<1x32x8xbf16>
      %63 = vector.shape_cast %62 : vector<1x32x8xbf16> to vector<32x8xbf16>
      %cst_51 = arith.constant dense<0.000000e+00> : vector<8x8xf32>
      %64 = tpu.matmul %61, %63, %cst_51 {dimension_numbers = #tpu.dot_dimension_numbers<[1], [0], [0], [1], [0, 0, 1, 1], [], []>} : vector<8x32xbf16>, vector<32x8xbf16>, vector<8x8xf32> -> vector<8x8xf32>
      %c0_52 = arith.constant 0 : index
      %c0_53 = arith.constant 0 : index
      %c0_54 = arith.constant 0 : index
      %65 = vector.load %arg11[%c0_52, %c0_53, %c0_54] : memref<1x1x8xf32, #tpu.memory_space<vmem>>, vector<1x1x8xf32>
      %66 = vector.shape_cast %65 : vector<1x1x8xf32> to vector<1x8xf32>
      %67 = vector.broadcast %66 : vector<1x8xf32> to vector<8x8xf32>
      %68 = arith.addf %64, %67 : vector<8x8xf32>
      %cst_55 = arith.constant 0.353553385 : f32
      %69 = vector.broadcast %cst_55 : f32 to vector<8x8xf32>
      %70 = arith.mulf %68, %69 : vector<8x8xf32>
      %71 = arith.truncf %70 : vector<8x8xf32> to vector<8x8xbf16>
      %c0_56 = arith.constant 0 : index
      %c0_57 = arith.constant 0 : index
      %72 = vector.load %arg17[%c0_56, %c0_57] : memref<8x8xbf16, #tpu.memory_space<vmem>>, vector<8x8xbf16>
      tpu.vector_store %arg17[%c0_56, %c0_57], %71 {strides = array<i32>} : memref<8x8xbf16, #tpu.memory_space<vmem>>, vector<8x8xbf16>,
      %cst_58 = arith.constant 0xFF800000 : f32
      %73 = vector.broadcast %cst_58 : f32 to vector<8x1xf32>
      %c0_59 = arith.constant 0 : index
      %c0_60 = arith.constant 0 : index
      %74 = vector.load %arg18[%c0_59, %c0_60] : memref<8x1xf32, #tpu.memory_space<vmem>>, vector<8x1xf32>
      tpu.vector_store %arg18[%c0_59, %c0_60], %73 {strides = array<i32>} : memref<8x1xf32, #tpu.memory_space<vmem>>, vector<8x1xf32>,
      %cst_61 = arith.constant 0.000000e+00 : f32
      %75 = vector.broadcast %cst_61 : f32 to vector<8x1xf32>
      %c0_62 = arith.constant 0 : index
      %c0_63 = arith.constant 0 : index
      %76 = vector.load %arg19[%c0_62, %c0_63] : memref<8x1xf32, #tpu.memory_space<vmem>>, vector<8x1xf32>
      tpu.vector_store %arg19[%c0_62, %c0_63], %75 {strides = array<i32>} : memref<8x1xf32, #tpu.memory_space<vmem>>, vector<8x1xf32>,
      %cst_64 = arith.constant 0.000000e+00 : f32
      %77 = vector.broadcast %cst_64 : f32 to vector<8x8xf32>
      %c0_65 = arith.constant 0 : index
      %c0_66 = arith.constant 0 : index
      %78 = vector.load %arg20[%c0_65, %c0_66] : memref<8x8xf32, #tpu.memory_space<vmem>>, vector<8x8xf32>
      tpu.vector_store %arg20[%c0_65, %c0_66], %77 {strides = array<i32>} : memref<8x8xf32, #tpu.memory_space<vmem>>, vector<8x8xf32>,
    } else {
    }
    %c0 = arith.constant 0 : index
    %c0_4 = arith.constant 0 : index
    %c0_5 = arith.constant 0 : index
    %8 = vector.load %arg5[%c0, %c0_4, %c0_5] : memref<1x8x32xbf16, #tpu.memory_space<vmem>>, vector<1x8x32xbf16>
    %9 = vector.shape_cast %8 : vector<1x8x32xbf16> to vector<8x32xbf16>
    %c0_6 = arith.constant 0 : index
    %c0_7 = arith.constant 0 : index
    %c0_8 = arith.constant 0 : index
    %10 = vector.load %arg9[%c0_6, %c0_7, %c0_8] : memref<1x32x8xbf16, #tpu.memory_space<vmem>>, vector<1x32x8xbf16>
    %11 = vector.shape_cast %10 : vector<1x32x8xbf16> to vector<32x8xbf16>
    %cst = arith.constant dense<0.000000e+00> : vector<8x8xf32>
    %12 = tpu.matmul %9, %11, %cst {dimension_numbers = #tpu.dot_dimension_numbers<[1], [0], [0], [1], [0, 0, 1, 1], [], []>} : vector<8x32xbf16>, vector<32x8xbf16>, vector<8x8xf32> -> vector<8x8xf32>
    %c0_9 = arith.constant 0 : index
    %c0_10 = arith.constant 0 : index
    %c0_11 = arith.constant 0 : index
    %13 = vector.load %arg12[%c0_9, %c0_10, %c0_11] : memref<1x1x8xf32, #tpu.memory_space<vmem>>, vector<1x1x8xf32>
    %14 = vector.shape_cast %13 : vector<1x1x8xf32> to vector<1x8xf32>
    %15 = vector.broadcast %14 : vector<1x8xf32> to vector<8x8xf32>
    %16 = arith.addf %12, %15 : vector<8x8xf32>
    %17 = arith.truncf %16 : vector<8x8xf32> to vector<8x8xbf16>
    %c0_12 = arith.constant 0 : index
    %c0_13 = arith.constant 0 : index
    %c0_14 = arith.constant 0 : index
    %18 = vector.load %arg6[%c0_12, %c0_13, %c0_14] : memref<1x8x32xbf16, #tpu.memory_space<vmem>>, vector<1x8x32xbf16>
    %19 = vector.shape_cast %18 : vector<1x8x32xbf16> to vector<8x32xbf16>
    %c0_15 = arith.constant 0 : index
    %c0_16 = arith.constant 0 : index
    %c0_17 = arith.constant 0 : index
    %20 = vector.load %arg10[%c0_15, %c0_16, %c0_17] : memref<1x32x8xbf16, #tpu.memory_space<vmem>>, vector<1x32x8xbf16>
    %21 = vector.shape_cast %20 : vector<1x32x8xbf16> to vector<32x8xbf16>
    %cst_18 = arith.constant dense<0.000000e+00> : vector<8x8xf32>
    %22 = tpu.matmul %19, %21, %cst_18 {dimension_numbers = #tpu.dot_dimension_numbers<[1], [0], [0], [1], [0, 0, 1, 1], [], []>} : vector<8x32xbf16>, vector<32x8xbf16>, vector<8x8xf32> -> vector<8x8xf32>
    %c0_19 = arith.constant 0 : index
    %c0_20 = arith.constant 0 : index
    %c0_21 = arith.constant 0 : index
    %23 = vector.load %arg13[%c0_19, %c0_20, %c0_21] : memref<1x1x8xf32, #tpu.memory_space<vmem>>, vector<1x1x8xf32>
    %24 = vector.shape_cast %23 : vector<1x1x8xf32> to vector<1x8xf32>
    %25 = vector.broadcast %24 : vector<1x8xf32> to vector<8x8xf32>
    %26 = arith.addf %22, %25 : vector<8x8xf32>
    %27 = arith.truncf %26 : vector<8x8xf32> to vector<8x8xbf16>
    %c0_22 = arith.constant 0 : index
    %c0_23 = arith.constant 0 : index
    %28 = vector.load %arg17[%c0_22, %c0_23] : memref<8x8xbf16, #tpu.memory_space<vmem>>, vector<8x8xbf16>
    %cst_24 = arith.constant dense<0.000000e+00> : vector<8x8xf32>
    %29 = tpu.matmul %28, %17, %cst_24 {dimension_numbers = #tpu.dot_dimension_numbers<[1], [1], [0], [0], [0, 0, 1, 0], [], []>} : vector<8x8xbf16>, vector<8x8xbf16>, vector<8x8xf32> -> vector<8x8xf32>
    %c0_25 = arith.constant 0 : index
    %c0_26 = arith.constant 0 : index
    %c0_27 = arith.constant 0 : index
    %30 = vector.load %arg7[%c0_25, %c0_26, %c0_27] : memref<1x1x8xf32, #tpu.memory_space<vmem>>, vector<1x1x8xf32>
    %31 = vector.shape_cast %30 : vector<1x1x8xf32> to vector<1x8xf32>
    %32 = vector.broadcast %31 : vector<1x8xf32> to vector<8x8xf32>
    %33 = arith.addf %29, %32 : vector<8x8xf32>
    %c0_28 = arith.constant 0 : index
    %c0_29 = arith.constant 0 : index
    %34 = vector.load %arg18[%c0_28, %c0_29] : memref<8x1xf32, #tpu.memory_space<vmem>>, vector<8x1xf32>
    %cst_30 = arith.constant dense<0xFF800000> : vector<8xf32>
    %35 = vector.multi_reduction <maximumf>, %33, %cst_30 [1] : vector<8x8xf32> to vector<8xf32>
    %36 = vector.shape_cast %35 : vector<8xf32> to vector<8x1xf32>
    %37 = arith.maximumf %34, %36 : vector<8x1xf32>
    %38 = arith.subf %34, %37 : vector<8x1xf32>
    %39 = math.exp %38 : vector<8x1xf32>
    %40 = vector.broadcast %37 : vector<8x1xf32> to vector<8x8xf32>
    %41 = arith.subf %33, %40 : vector<8x8xf32>
    %42 = math.exp %41 : vector<8x8xf32>
    %c0_31 = arith.constant 0 : index
    %c0_32 = arith.constant 0 : index
    %43 = vector.load %arg19[%c0_31, %c0_32] : memref<8x1xf32, #tpu.memory_space<vmem>>, vector<8x1xf32>
    %44 = arith.mulf %39, %43 : vector<8x1xf32>
    %cst_33 = arith.constant dense<0.000000e+00> : vector<8xf32>
    %45 = vector.multi_reduction <add>, %42, %cst_33 [1] : vector<8x8xf32> to vector<8xf32>
    %46 = vector.shape_cast %45 : vector<8xf32> to vector<8x1xf32>
    %47 = arith.addf %44, %46 : vector<8x1xf32>
    %c0_34 = arith.constant 0 : index
    %c0_35 = arith.constant 0 : index
    %48 = vector.load %arg19[%c0_34, %c0_35] : memref<8x1xf32, #tpu.memory_space<vmem>>, vector<8x1xf32>
    tpu.vector_store %arg19[%c0_34, %c0_35], %47 {strides = array<i32>} : memref<8x1xf32, #tpu.memory_space<vmem>>, vector<8x1xf32>,
    %c0_36 = arith.constant 0 : index
    %c0_37 = arith.constant 0 : index
    %49 = vector.load %arg20[%c0_36, %c0_37] : memref<8x8xf32, #tpu.memory_space<vmem>>, vector<8x8xf32>
    %50 = vector.broadcast %39 : vector<8x1xf32> to vector<8x8xf32>
    %51 = arith.mulf %50, %49 : vector<8x8xf32>
    %52 = arith.truncf %42 : vector<8x8xf32> to vector<8x8xbf16>
    %cst_38 = arith.constant dense<0.000000e+00> : vector<8x8xf32>
    %53 = tpu.matmul %52, %27, %cst_38 {dimension_numbers = #tpu.dot_dimension_numbers<[1], [0], [0], [1], [0, 0, 1, 1], [], []>} : vector<8x8xbf16>, vector<8x8xbf16>, vector<8x8xf32> -> vector<8x8xf32>
    %54 = arith.addf %51, %53 : vector<8x8xf32>
    %c0_39 = arith.constant 0 : index
    %c0_40 = arith.constant 0 : index
    %55 = vector.load %arg20[%c0_39, %c0_40] : memref<8x8xf32, #tpu.memory_space<vmem>>, vector<8x8xf32>
    tpu.vector_store %arg20[%c0_39, %c0_40], %54 {strides = array<i32>} : memref<8x8xf32, #tpu.memory_space<vmem>>, vector<8x8xf32>,
    %c0_41 = arith.constant 0 : index
    %c0_42 = arith.constant 0 : index
    %56 = vector.load %arg18[%c0_41, %c0_42] : memref<8x1xf32, #tpu.memory_space<vmem>>, vector<8x1xf32>
    tpu.vector_store %arg18[%c0_41, %c0_42], %37 {strides = array<i32>} : memref<8x1xf32, #tpu.memory_space<vmem>>, vector<8x1xf32>,
    %c0_i32_43 = arith.constant 0 : i32
    %57 = arith.cmpi eq, %arg3, %c0_i32_43 : i32
    %58 = arith.extui %57 : i1 to i32
    %c0_i32_44 = arith.constant 0 : i32
    %59 = arith.cmpi ne, %58, %c0_i32_44 : i32
    scf.if %59 {
      %c0_45 = arith.constant 0 : index
      %c0_46 = arith.constant 0 : index
      %60 = vector.load %arg20[%c0_45, %c0_46] : memref<8x8xf32, #tpu.memory_space<vmem>>, vector<8x8xf32>
      %c0_47 = arith.constant 0 : index
      %c0_48 = arith.constant 0 : index
      %61 = vector.load %arg19[%c0_47, %c0_48] : memref<8x1xf32, #tpu.memory_space<vmem>>, vector<8x1xf32>
      %62 = tpu.reciprocal %61 {approx = true} : vector<8x1xf32> -> vector<8x1xf32>
      %63 = vector.broadcast %62 : vector<8x1xf32> to vector<8x8xf32>
      %64 = arith.mulf %60, %63 : vector<8x8xf32>
      %c0_49 = arith.constant 0 : index
      %c0_50 = arith.constant 0 : index
      %c0_51 = arith.constant 0 : index
      %65 = vector.load %arg16[%c0_49, %c0_50, %c0_51] : memref<1x8x32xf32, #tpu.memory_space<vmem>>, vector<1x8x32xf32>
      %66 = vector.shape_cast %65 : vector<1x8x32xf32> to vector<8x32xf32>
      %67 = arith.truncf %64 : vector<8x8xf32> to vector<8x8xbf16>
      %c0_52 = arith.constant 0 : index
      %c0_53 = arith.constant 0 : index
      %c0_54 = arith.constant 0 : index
      %68 = vector.load %arg14[%c0_52, %c0_53, %c0_54] : memref<1x8x32xbf16, #tpu.memory_space<vmem>>, vector<1x8x32xbf16>
      %69 = vector.shape_cast %68 : vector<1x8x32xbf16> to vector<8x32xbf16>
      %cst_55 = arith.constant dense<0.000000e+00> : vector<8x32xf32>
      %70 = tpu.matmul %67, %69, %cst_55 {dimension_numbers = #tpu.dot_dimension_numbers<[1], [0], [0], [1], [0, 0, 1, 1], [], []>} : vector<8x8xbf16>, vector<8x32xbf16>, vector<8x32xf32> -> vector<8x32xf32>
      %71 = arith.addf %66, %70 : vector<8x32xf32>
      %c0_56 = arith.constant 0 : index
      %c0_57 = arith.constant 0 : index
      %c0_58 = arith.constant 0 : index
      %72 = vector.load %arg16[%c0_56, %c0_57, %c0_58] : memref<1x8x32xf32, #tpu.memory_space<vmem>>, vector<1x8x32xf32>
      %73 = vector.shape_cast %72 : vector<1x8x32xf32> to vector<8x32xf32>
      %74 = vector.shape_cast %71 : vector<8x32xf32> to vector<1x8x32xf32>
      tpu.vector_store %arg16[%c0_56, %c0_57, %c0_58], %74 {strides = array<i32>} : memref<1x8x32xf32, #tpu.memory_space<vmem>>, vector<1x8x32xf32>,
    } else {
    }
    return
  }
  func.func @transform_0(%arg0: i32, %arg1: i32, %arg2: i32, %arg3: i32) -> (i32, i32, i32) {
    %c0_i32 = arith.constant 0 : i32
    %c0_i32_0 = arith.constant 0 : i32
    return %arg0, %arg1, %c0_i32 : i32, i32, i32
  }
  func.func @transform_1(%arg0: i32, %arg1: i32, %arg2: i32, %arg3: i32) -> (i32, i32, i32) {
    %c0_i32 = arith.constant 0 : i32
    %c0_i32_0 = arith.constant 0 : i32
    return %arg0, %arg3, %c0_i32 : i32, i32, i32
  }
  func.func @transform_2(%arg0: i32, %arg1: i32, %arg2: i32, %arg3: i32) -> (i32, i32, i32) {
    %c0_i32 = arith.constant 0 : i32
    %c0_i32_0 = arith.constant 0 : i32
    return %arg0, %arg3, %c0_i32 : i32, i32, i32
  }
  func.func @transform_3(%arg0: i32, %arg1: i32, %arg2: i32, %arg3: i32) -> (i32, i32, i32) {
    %c0_i32 = arith.constant 0 : i32
    %c0_i32_0 = arith.constant 0 : i32
    return %arg0, %c0_i32, %arg3 : i32, i32, i32
  }
  func.func @transform_4(%arg0: i32, %arg1: i32, %arg2: i32, %arg3: i32) -> (i32, i32, i32) {
    %c0_i32 = arith.constant 0 : i32
    %c0_i32_0 = arith.constant 0 : i32
    %c0_i32_1 = arith.constant 0 : i32
    return %arg2, %c0_i32, %c0_i32_0 : i32, i32, i32
  }
  func.func @transform_5(%arg0: i32, %arg1: i32, %arg2: i32, %arg3: i32) -> (i32, i32, i32) {
    %c0_i32 = arith.constant 0 : i32
    %c0_i32_0 = arith.constant 0 : i32
    %c0_i32_1 = arith.constant 0 : i32
    return %arg2, %c0_i32, %c0_i32_0 : i32, i32, i32
  }
  func.func @transform_6(%arg0: i32, %arg1: i32, %arg2: i32, %arg3: i32) -> (i32, i32, i32) {
    %c0_i32 = arith.constant 0 : i32
    %c0_i32_0 = arith.constant 0 : i32
    %c0_i32_1 = arith.constant 0 : i32
    return %arg2, %c0_i32, %c0_i32_0 : i32, i32, i32
  }
  func.func @transform_7(%arg0: i32, %arg1: i32, %arg2: i32, %arg3: i32) -> (i32, i32, i32) {
    %c0_i32 = arith.constant 0 : i32
    %c0_i32_0 = arith.constant 0 : i32
    %c0_i32_1 = arith.constant 0 : i32
    return %arg2, %c0_i32, %c0_i32_0 : i32, i32, i32
  }
  func.func @transform_8(%arg0: i32, %arg1: i32, %arg2: i32, %arg3: i32) -> (i32, i32, i32) {
    %c0_i32 = arith.constant 0 : i32
    %c0_i32_0 = arith.constant 0 : i32
    %c0_i32_1 = arith.constant 0 : i32
    return %arg2, %c0_i32, %c0_i32_0 : i32, i32, i32
  }
  func.func @transform_9(%arg0: i32, %arg1: i32, %arg2: i32, %arg3: i32) -> (i32, i32, i32) {
    %c0_i32 = arith.constant 0 : i32
    %c0_i32_0 = arith.constant 0 : i32
    %c0_i32_1 = arith.constant 0 : i32
    return %arg2, %c0_i32, %c0_i32_0 : i32, i32, i32
  }
  func.func @transform_10(%arg0: i32, %arg1: i32, %arg2: i32, %arg3: i32) -> (i32, i32, i32) {
    %c0_i32 = arith.constant 0 : i32
    %c0_i32_0 = arith.constant 0 : i32
    %c0_i32_1 = arith.constant 0 : i32
    return %arg2, %c0_i32, %c0_i32_0 : i32, i32, i32
  }
  func.func @transform_11(%arg0: i32, %arg1: i32, %arg2: i32, %arg3: i32) -> (i32, i32) {
    %c0_i32 = arith.constant 0 : i32
    %c0_i32_0 = arith.constant 0 : i32
    %c0_i32_1 = arith.constant 0 : i32
    return %c0_i32, %c0_i32_0 : i32, i32
  }
  func.func @transform_12(%arg0: i32, %arg1: i32, %arg2: i32, %arg3: i32) -> (i32, i32, i32) {
    %c0_i32 = arith.constant 0 : i32
    %c0_i32_0 = arith.constant 0 : i32
    return %arg0, %arg1, %c0_i32 : i32, i32, i32
  }
}

</mosaic_0001>

<bundles_post_ra>
// kernel: multi_headed_attention.1
= control target key start
LH: loop header
LB: loop body
LE: loop exit
PB: predicated region body
PF: predicated region fallthrough
CT: control target
= control target key end

     0   :  { %s1909_s0 = inlined_call_operand.vmem [shape: bf16[2,8,32], index: 0, kind: input, shape index: {}]   ;;  %s1910_s1 = inlined_call_operand.vmem [shape: bf16[2,8,32], index: 1, kind: input, shape index: {}]   ;;  %s1911_s2 = inlined_call_operand.vmem [shape: bf16[2,8,32], index: 2, kind: input, shape index: {}]   ;;  %s1912_s3 = inlined_call_operand.vmem [shape: f32[2,1,8], index: 3, kind: input, shape index: {}]   ;;  %s1913_s4 = inlined_call_operand.vmem [shape: bf16[4,32,8], index: 4, kind: input, shape index: {}]   ;;  %s1914_s5 = inlined_call_operand.vmem [shape: bf16[4,32,8], index: 5, kind: input, shape index: {}]   ;;  %s1915_s6 = inlined_call_operand.vmem [shape: bf16[4,32,8], index: 6, kind: input, shape index: {}]   ;;  %s1916_s7 = inlined_call_operand.vmem [shape: f32[4,1,8], index: 7, kind: input, shape index: {}]   ;;  %s1917_s8 = inlined_call_operand.vmem [shape: f32[4,1,8], index: 8, kind: input, shape index: {}]   ;;  %s1918_s9 = inlined_call_operand.vmem [shape: f32[4,1,8], index: 9, kind: input, shape index: {}]   ;;  %s1919_s10 = inlined_call_operand.vmem [shape: bf16[4,8,32], index: 10, kind: input, shape index: {}]   ;;  %s1920_s11 = inlined_call_operand.vmem [shape: f32[1,32], index: 11, kind: input, shape index: {}]   ;;  %s1921_s12 = inlined_call_operand.hbm [shape: f32[2,8,32], index: 12, kind: output, shape index: {}]  }
   0x1   :  { %1937 = sst [smem:[#allocation22_spill]] %s1912_s3 }
   0x2   :  { %1938 = sst [smem:[#allocation23_spill]] %s1913_s4 }
   0x3   :  { %1939 = sst [smem:[#allocation24_spill]] %s1914_s5 }
   0x4   :  { %1940 = sst [smem:[#allocation25_spill]] %s1920_s11 }
   0x5   :  { %1941 = sst [smem:[#allocation26_spill]] %s1921_s12 }
   0x6   :  { %17 = vsyncpa [#allocation7], 0 }
   0x7   :  { %19 = vsyncpa [#allocation7 + $0x1], 0  ;;  %s1647_s21 = smov 0   ;;  %s1649_s22 = smov 0  }
   0x8   :  { %s1651_s23 = smov 0   ;;  %s1653_s24 = smov 0  }
   0x9   :  { %s1655_s25 = smov 0   ;;  %s1657_s26 = smov 0  }
   0xa   :  { %s1659_s27 = smov 0   ;;  %s1661_s28 = smov 0  }
   0xb LB: > { %1942 = sst [smem:[#allocation9_spill]] %s1547_s21  ;;  %s1293_s29 = sadd.s32 4294967295, %s1575_s28   ;;  %s1575_s28 = sphi %s1661_s28, %s25_s28   ;;  %s1571_s27 = sphi %s1659_s27, %s1981_s27   ;;  %s1567_s26 = sphi %s1657_s26, %s1980_s26   ;;  %s1563_s25 = sphi %s1655_s25, %s1979_s25   ;;  %s1559_s24 = sphi %s1653_s24, %s1978_s24   ;;  %s1555_s23 = sphi %s1651_s23, %s1977_s23   ;;  %s1551_s22 = sphi %s1649_s22, %s1976_s22   ;;  %s1547_s21 = sphi %s1647_s21, %s1975_s21  }
   0xc   : > { %1943 = sst [smem:[#allocation10_spill]] %s1551_s22  ;;  %s1294_s30 = sadd.s32 4294967294, %s1575_s28  }
   0xd   : > { %1944 = sst [smem:[#allocation11_spill]] %s1555_s23  ;;  %s43_s13 = sadd.s32 1, %s1567_s26 }
   0xe   : > { %1945 = sst [smem:[#allocation12_spill]] %s1559_s24  ;;  %p45_p0 = scmp.ge.s32.totalorder %s43_s13, 4 }
   0xf   : > { %1946 = sst [smem:[#allocation13_spill]] %s1563_s25  ;;  %s51_s14 = sadd.s32 1, %s1571_s27 }
  0x10   : > { %1947 = sst [smem:[#allocation14_spill]] %s1567_s26  ;;  %p385_p1 = scmp.ne.s32.totalorder %s1555_s23, %s1551_s22 }
  0x11   : > { %1948 = sst [smem:[#allocation15_spill]] %s1571_s27  ;;  %p386_p2 = scmp.eq.s32.totalorder %s1293_s29, 7 }
  0x12   : > { %1949 = sst [smem:[#allocation16_spill]] %s1575_s28  ;;  %s1983_s13 = smov (%p45_p0, %s43_s13), 0 }
  0x13   : > { %1950 = sst [smem:[#allocation17_spill]] %s1983_s13  ;;  %s1985_s14 = smov (!%p45_p0, %s51_s14), %s1571_s27 }
  0x14   : > { %p1696_p3 = por %p386_p2, %p385_p1  ;;  %p391_p4 = scmp.ne.s32.totalorder %s1551_s22, %s1547_s21 }
  0x15   : > { %p53_p5 = scmp.ge.s32.totalorder %s1985_s14, 2  ;;  %p392_p6 = scmp.eq.s32.totalorder %s1294_s30, 7 }
  0x16   : > { %s1951_s15 = scalar_select %p1696_p3, 1, 0 }
  0x17   : > { %p1297_p7 = scmp.ge.s32.totalorder %s1575_s28, 1  ;;  %p501_p8 = scmp.lt.s32.totalorder %s1575_s28, 9 }
  0x18   : > { %1952 = sst [smem:[#allocation18_spill]] %s1951_s15  ;;  %s1987_s14 = smov (%p53_p5, %s1985_s14), 0 }
  0x19   : > { %1953 = sst [smem:[#allocation19_spill]] %s1987_s14  ;;  %p1706_p9 = por %p392_p6, %p391_p4 }
  0x1a   : > { %p502_p10 = pnand %p1297_p7, %p501_p8  ;;  %s370_s17 = ssub.s32 %s1571_s27, %s1987_s14 }
  0x1b   : > { %s1954_s16 = scalar_select %p1706_p9, 1, 0 }
  0x1c   : > { %s375_s18 = sadd.s32 1, %s1555_s23  ;;  %p373_p11 = scmp.eq.s32.totalorder %s370_s17, 0 }
  0x1d   : > { %1955 = sst [smem:[#allocation20_spill]] %s1954_s16  ;;  %505 = sbr.rel (%p502_p10) target bundleno = 1312 (0x520), region = 68 }
  0x1e   : > { %s1714_s19 = scalar_select %p373_p11, %s1555_s23, %s375_s18  }
  0x1f   : > { %s1923_s20 = sand.u32 (!%p502_p10), 1, %s1551_s22   ;;  %p593_p12 = scmp.lt.s32.totalorder (!%p502_p10), %s1563_s25, 1 }
  0x20   : > { %1956 = sst [smem:[#allocation21_spill]] %s1714_s19  ;;  %s1298_s29 = sshll.u32 (!%p502_p10), %s1923_s20, 3 }
  0x21   : > { %p620_p13 = scmp.lt.s32.totalorder (!%p502_p10), %s1559_s24, 3  ;;  %p649_p0 = scmp.eq.s32.totalorder (!%p502_p10), %s1559_s24, 0 }
  0x22   : > { %s1958_s4 = sld [smem:[#allocation23_spill]] (!%p502_p10)  ;;  %s1959_s5 = sld [smem:[#allocation24_spill]] (!%p502_p10) }
  0x23   : > { %s1777_s3 = scalar_lea.vmem (!%p502_p10), [#allocation6], %s1298_s29 }
  0x24   : > { %s1723_s30 = scalar_select %p593_p12, %s1563_s25, 1 }
  0x25   : > { %s1726_s17 = scalar_select %p620_p13, %s1559_s24, 3 }
  0x26   : > { %s1729_s18 = sshll.u32 %s1723_s30, 2  ;;  %654 = sbr.rel (!%p649_p0) target bundleno = 51 (0x33), region = 72  ;;  %vm662_vm0 = vcmask (%p649_p0), 261120  }
  0x27   : > { %s1331_s22 = sshll.u32 %s1726_s17, 4  ;;  %s637_s21 = scalar_lea.vmem %s1916_s7, %s1726_s17 }
  0x28   : > { %s624_s13 = scalar_lea.vmem %s1958_s4, %s1331_s22  ;;  %s629_s20 = scalar_lea.vmem %s1959_s5, %s1331_s22 }
  0x29   : > { %s1757_s27 = scalar_lea.vmem %s1915_s6, %s1331_s22  ;;  %s640_s15 = scalar_lea.vmem %s1917_s8, %s1726_s17 }
  0x2a   : > { %s643_s25 = scalar_lea.vmem %s1918_s9, %s1726_s17  ;;  %s1308_s4 = sshll.u32 %s1726_s17, 2 }
  0x2b   : > { %s1775_s5 = scalar_lea.vmem %s1919_s10, %s1308_s4  ;;  %s1961_s16 = sld [smem:[#allocation25_spill]] (%p649_p0) }
  0x31   : > { %v1310_v0 = vld [vmem:[%s1961_s16] ss:$0 sm:$0xff] }
  0x32   : > { %663 = vst.msk [vmem:[%s1777_s3] sm:$0xff] %vm662_vm0, %v1310_v0 }
  0x33 PF: > { %v1469_v1 = vld [vmem:[%s624_s13] sm:$0xff]   ;;  %v1577_v2 = vmov 0.0   ;;  %v1471_v4 = vld [vmem:[%s624_s13 + $0x8] sm:$0xff]   ;;  %vm1578_vm1 = vmmov 0   ;;  %s1962_s29 = scalar_lea.vmem %s1909_s0, %s1729_s18  ;;  %vm691_vm2 = vcmask 261120   ;;  %s1963_s28 = scalar_lea.vmem %s1910_s1, %s1729_s18  ;;  %vm742_vm3 = vcmask 64512  }
  0x34   : > { %1350 = vmatprep.subr.bf16.mxu0 %v1577_v2  ;;  %1358 = vmatprep.subr.bf16.mxu1 %v1577_v2  ;;  %v1470_v3 = vld [vmem:[%s629_s20] sm:$0xff]   ;;  %v1472_v5 = vld [vmem:[%s629_s20 + $0x8] sm:$0xff]   ;;  %743 = vst.msk [vmem:[#allocation5] sm:$0xff] %vm742_vm3, %v1577_v2  ;;  %vm737_vm4 = vcmask 60416   ;;  %vm739_vm5 = vcmask 7168   ;;  %v1579_v26 = vmov -inf   ;;  %s1964_s22 = scalar_lea.vmem %s1911_s2, %s1729_s18 }
  0x35   : > { %1351 = vmatpush3.bf16.msra.mxu0 %v1469_v1  ;;  %1354 = vmatprep.mubr.msk.bf16.mxu0 %vm1578_vm1, %v1577_v2  ;;  %v667_v6 = vld [vmem:[%s1962_s29] sm:$0xf]  ;;  %740 = vst.msk [vmem:[#allocation3] sm:$0xff] %vm739_vm5, %v1579_v26  ;;  %741 = vst.msk [vmem:[#allocation4] sm:$0xff] %vm739_vm5, %v1577_v2  ;;  %v1474_v27 = vld [vmem:[%s1757_s27 + $0x8] sm:$0xff]   ;;  %s1965_s16 = sld [smem:[#allocation22_spill]] }
  0x36   : > { %1359 = vmatpush3.bf16.msra.mxu1 %v1470_v3  ;;  %1352 = vmatprep.subr.bf16.mxu0 %v1577_v2  ;;  %v744_v7 = vld [vmem:[%s1963_s28] sm:$0xf]  ;;  %v1580_v36 = vmov 0   ;;  %vm971_vm6 = vcmask 1043456   ;;  %s1967_s17 = sld [smem:[#allocation13_spill]]  ;;  %s1096_s19 = sshll.u32 %s1777_s3, 4  ;;  %s1854_s19 = int_to_ptr.vmem [resolvable:$true] %s1096_s19 }
  0x37   : > { %1360 = vmatprep.subr.bf16.mxu1 %v1577_v2  ;;  %1362 = vmatprep.mubr.msk.bf16.mxu1 %vm1578_vm1, %v1577_v2  ;;  %v1311_v8 = vld [vmem:[%s637_s21] ss:$0 sm:$0xff]  ;;  %s1970_s12 = sld [smem:[#allocation26_spill]]  ;;  %s1481_s24 = scalar_lea.vmem %s1854_s19, 128 }
  0x38   : > { %v1315_v9 = vld [vmem:[%s640_s15] ss:$0 sm:$0xff]  ;;  %1467 = vset.pattern.permute.xlu0 %v1580_v36  ;;  %1468 = vset.pattern.permute.xlu1 %v1580_v36  ;;  %p1482_p1 = scmp.ne.s32.totalorder %s1854_s19, %s1481_s24  ;;  %s1581_s14 = smov [#allocation6]  }
  0x39   : > { %1353 = vmatpush3.bf16.msra.mxu0 %v1471_v4  ;;  %v1473_v25 = vld [vmem:[%s1757_s27] sm:$0xff]   ;;  %s1485_s21 = sshll.u32 %s1581_s14, 4  ;;  %s1486_s21 = int_to_ptr.vmem [resolvable:$false] %s1485_s21 }
  0x3a   : > { %1361 = vmatpush3.bf16.msra.mxu1 %v1472_v5  ;;  %1366 = vmatprep.subr.bf16.mxu0 %v1577_v2  ;;  %v813_v28 = vld [vmem:[%s1964_s22] sm:$0xf]  ;;  %p1483_p2 = pnand %p1482_p1, %p1696_p3  ;;  %s1487_s15 = scalar_lea.vmem %s1486_s21, 256 }
  0x3b   : > { %1374 = vmatprep.subr.bf16.mxu1 %v1577_v2  ;;  %s1966_s4 = scalar_lea.vmem %s1965_s16, %s1723_s30  ;;  %v1319_v41 = vld [vmem:[%s643_s25] ss:$0 sm:$0xff]  ;;  %v960_v1 = vld [vmem:[#allocation5] sm:$0xff]  ;;  %p1488_p5 = scmp.lt.s32.totalorder %s1854_s19, %s1486_s21 }
  0x3c   : > { %1355 = vmatmul.mubr.msk.bf16.vlgmr.msra.gmra.mrb[0].mxu0 %vm691_vm2, %v667_v6  ;;  %v1323_v29 = vld [vmem:[%s1966_s4] ss:$0 sm:$0xff]  ;;  %v936_v37 = vld [vmem:[#allocation3] sm:$0xff]  ;;  %v952_v59 = vld [vmem:[#allocation4] sm:$0xff]  ;;  %s1328_s25 = sshll.u32 %s1967_s17, 7  ;;  %p1484_p4 = pneg %p1483_p2 }
  0x3d   : > { %1363 = vmatmul.mubr.msk.bf16.vlgmr.msra.gmra.mrb[0].mxu1 %vm691_vm2, %v744_v7  ;;  %1370 = vmatprep.mubr.msk.bf16.mxu0 %vm1578_vm1, %v1577_v2  ;;  %v1032_v57 = vld [vmem:[%s1775_s5] sm:$0xf]  ;;  %s1968_s5 = sld [smem:[#allocation10_spill]]  ;;  %s1852_s28 = scalar_lea.hbm %s1970_s12, %s1328_s25 }
  0x3e   : > { %1376 = vmatprep.mubr.msk.bf16.mxu1 %vm1578_vm1, %v1577_v2  ;;  %1367 = vmatpush3.bf16.msra.mxu0 %v1473_v25  ;;  %v1037_v58 = vsel %vm971_vm6, %v1032_v57, 0  ;;  %p1489_p6 = scmp.lt.s32.totalorder %s1487_s15, %s1481_s24 }
  0x3f   : > { %1368 = vmatprep.subr.bf16.mxu0 %v1577_v2 }
  0x40   : > { %p1490_p7 = por %p1489_p6, %p1488_p5 }
  0x42   : > { %1369 = vmatpush3.bf16.msra.mxu0 %v1474_v27  ;;  %p1491_p8 = pnand %p1490_p7, %p1484_p4 }
  0x43   : > { %1380 = vmatprep.subr.bf16.mxu0 %v1577_v2  ;;  %s1971_s20 = sand.u32 1, %s1968_s5  }
  0x44   : > { %s1082_s11 = scalar_lea.sflag [#allocation7], %s1971_s20 }
  0x45   : > { %1371 = vmatmul.mubr.msk.bf16.vlgmr.msra.gmra.mrb[4].mxu0 %vm691_vm2, %v813_v28 }
  0x46   : > { %1382 = vmatprep.mubr.msk.bf16.mxu0 %vm1578_vm1, %v1577_v2 }
 0x10f   : > { %v729_v10 = vpop.f32.mrb[0].mxu0 }
 0x110   : > { %v730_v11 = vadd.f32 %v1311_v8, %v729_v10  ;;  %v806_v12 = vpop.f32.mrb[0].mxu1  ;;  %v1356_v13 = vpop.f32.mrb[1].mxu0 }
 0x111   : > { %v807_v14 = vadd.f32 %v1315_v9, %v806_v12  ;;  %v1364_v15 = vpop.f32.mrb[1].mxu1  ;;  %v732_v16 = vpop.f32.mrb[2].mxu0  ;;  %v1030_v13 = vld [vmem:[%s1777_s3] sm:$0xff] }
 0x112   : > { %v735_v17 = vmul.f32 0.35355338, %v730_v11  ;;  %v809_v18 = vpop.f32.mrb[2].mxu1  ;;  %v1357_v19 = vpop.f32.mrb[3].mxu0 }
 0x113   : > { %v812_v20 = vpack.c.bf16 %v807_v14, %v807_v14  ;;  %v1365_v21 = vpop.f32.mrb[3].mxu1 }
 0x114   : > { %v736_v22 = vpack.c.bf16 %v735_v17, %v735_v17 }
 0x115   : > { %v894_v23 = vsel %vm742_vm3, %v812_v20, 0 }
 0x116   : > { %738 = vst.msk [vmem:[#allocation2] sm:$0xf] %vm737_vm4, %v736_v22  ;;  %1375 = vmatpush3.bf16.xpose.msra.mxu1 %v894_v23 }
 0x117   : > { %1386 = vmatprep.subr.bf16.mxu1 %v1577_v2 }
 0x118   : > { %v874_v42 = vpop.f32.mrb[4].mxu0 }
 0x119   : > { %v875_v43 = vadd.f32 %v1319_v41, %v874_v42  ;;  %v1372_v44 = vpop.f32.mrb[5].mxu0 }
 0x11a   : > { %v877_v45 = vpop.f32.mrb[6].mxu0 }
 0x11b   : > { %v880_v46 = vpack.c.bf16 %v875_v43, %v875_v43  ;;  %v1373_v47 = vpop.f32.mrb[7].mxu0 }
 0x11d   : > { %v881_v24 = vld [vmem:[#allocation2] sm:$0xf]  ;;  %v973_v48 = vsel %vm971_vm6, %v880_v46, 0 }
 0x11e   : > { %1377 = vmatmul.mubr.msk.bf16.vlgmr.msra.gmra.mrb[4].mxu1 %vm742_vm3, %v881_v24  ;;  %1381 = vmatpush3.bf16.msra.mxu0 %v973_v48 }
 0x11f   : > { %1388 = vmatprep.mubr.msk.bf16.mxu1 %vm1578_vm1, %v1577_v2  ;;  %1387 = vmatpush3.bf16.msra.mxu1 %v1037_v58 }
 0x1f1   : > { %v930_v30 = vpop.f32.mrb[4].mxu1 }
 0x1f2   : > { %v931_v31 = vadd.f32 %v1323_v29, %v930_v30  ;;  %v1378_v32 = vpop.f32.mrb[5].mxu1 }
 0x1f3   : > { %v933_v33 = vpop.f32.mrb[6].mxu1 }
 0x1f4   : > { %v1379_v34 = vpop.f32.mrb[7].mxu1  ;;  %v937_v35 = vsel %vm742_vm3, %v931_v31, -inf }
 0x1f5   : > { %938 = vmax.xlane.f32.xlu0 %v937_v35 }
 0x282   : > { %v939_v38 = vpop.xlane.xlu0 %938 }
 0x283   : > { %v940_v39 = vmax.f32 %v936_v37, %v939_v38 }
 0x285   : > { %v941_v40 = vsub.f32 %v936_v37, %v940_v39  ;;  %1017 = vst.msk [vmem:[#allocation3] sm:$0xff] %vm739_vm5, %v940_v39  ;;  %946 = vperm.xlu0 %1467, %v940_v39  }
 0x287   : > { %v942_v55 = vmul.f32 1.442695, %v941_v40 }
 0x304   : > { %v947_v49 = vpop.permute.xlu0 %946 }
 0x305   : > { %v949_v50 = vsub.f32 %v931_v31, %v947_v49 }
 0x307   : > { %v950_v51 = vmul.f32 1.442695, %v949_v50 }
 0x309   : > { %1475 = vpow2.f32 %v950_v51 }
 0x30a   : > { %1477 = vpow2.f32 %v942_v55 }
 0x313   : > { %v1476_v52 = vpop.eup %1475 }
 0x314   : > { %v954_v53 = vsel %vm742_vm3, %v1476_v52, 0.0  ;;  %v967_v54 = vpack.c.bf16 %v1476_v52, %v1476_v52  ;;  %v1478_v56 = vpop.eup %1477 }
 0x315   : > { %955 = vadd.xlane.f32.xlu1 %v954_v53  ;;  %v953_v60 = vmul.f32 %v1478_v56, %v952_v59 }
 0x316   : > { %1383 = vmatmul.mubr.msk.bf16.vlgmr.msra.gmra.mrb[8].mxu0 %vm742_vm3, %v967_v54 }
 0x326   : > { %963 = vperm.xlu1 %1468, %v1478_v56  }
 0x3a2   : > { %v956_v61 = vpop.xlane.xlu1 %955 }
 0x3a3   : > { %v957_v62 = vadd.f32 %v956_v61, %v953_v60 }
 0x3a5   : > { %959 = vst.msk [vmem:[#allocation4] sm:$0xff] %vm739_vm5, %v957_v62 }
 0x3a6   : > { %v964_v2 = vpop.permute.xlu1 %963 }
 0x3a7   : > { %v966_v3 = vmul.f32 %v964_v2, %v960_v1 }
 0x3ac   : > { %v1022_v63 = vld [vmem:[#allocation4] sm:$0xff] }
 0x3ad   : > { %1479 = vrcp.f32 %v1022_v63 }
 0x3b7   : > { %v1480_v0 = vpop.eup %1479 }
 0x3b8   : > { %1026 = vperm.xlu1 %1468, %v1480_v0  }
 0x3e9   : > { %v1009_v4 = vpop.f32.mrb[8].mxu0 }
 0x3ea   : > { %v1015_v5 = vadd.f32 %v1009_v4, %v966_v3  ;;  %v1384_v6 = vpop.f32.mrb[9].mxu0 }
 0x3eb   : > { %v1012_v7 = vpop.f32.mrb[10].mxu0 }
 0x3ec   : > { %1016 = vst.msk [vmem:[#allocation5] sm:$0xff] %vm742_vm3, %v1015_v5  ;;  %v1385_v8 = vpop.f32.mrb[11].mxu0 }
 0x3f3   : > { %v1021_v10 = vld [vmem:[#allocation5] sm:$0xff] }
 0x437   : > { %v1027_v9 = vpop.permute.xlu1 %1026 }
 0x438   : > { %v1029_v11 = vmul.f32 %v1027_v9, %v1021_v10 }
 0x43a   : > { %v1031_v12 = vpack.c.bf16 %v1029_v11, %v1029_v11 }
 0x43c   : > { %1389 = vmatmul.mubr.msk.bf16.vlgmr.msra.gmra.mrb[8].mxu1 %vm742_vm3, %v1031_v12 }
 0x50f   : > { %v1073_v14 = vpop.f32.mrb[8].mxu1 }
 0x510   : > { %v1079_v15 = vadd.f32 %v1073_v14, %v1030_v13  ;;  %v1390_v16 = vpop.f32.mrb[9].mxu1 }
 0x511   : > { %v1076_v17 = vpop.f32.mrb[10].mxu1 }
 0x512   : > { %1080 = vst.msk [vmem:[%s1777_s3] sm:$0xff] %vm691_vm2, %v1079_v15  ;;  %v1391_v18 = vpop.f32.mrb[11].mxu1 }
 0x513   : > { %1494 = shalt.err (!%p1491_p8)
}
 0x514   : > { %s1495_s3 = scalar_lea.hbm %s1852_s28, 128  ;;  %s1499_s23 = scalar_lea.hbm %s1970_s12, 256 }
 0x515   : > { %p1496_p10 = scmp.ne.s32.totalorder %s1852_s28, %s1495_s3  ;;  %p1500_p13 = scmp.lt.u32.totalorder %s1852_s28, %s1970_s12 }
 0x516   : > { %p1501_p0 = scmp.lt.u32.totalorder %s1499_s23, %s1495_s3  ;;  %p1503_p2 = scmp.lt.u32.totalorder %s1495_s3, %s1852_s28 }
 0x517   : > { %p1497_p11 = pnand %p1496_p10, %p1696_p3 }
 0x518   : > { %p1502_p1 = por %p1501_p0, %p1500_p13 }
 0x519   : > { %p1498_p12 = pneg %p1497_p11 }
 0x51a   : > { %p1504_p4 = por %p1503_p2, %p1502_p1 }
 0x51c   : > { %p1505_p5 = pnand %p1504_p4, %p1498_p12 }
 0x51e   : > { %1508 = shalt.err (!%p1505_p5)
}
 0x51f   : > { %1392 = dma.vmem_to_hbm [thread:$0]  (%p1696_p3), %s1854_s19, 128, %s1852_s28, %s1082_s11  }
 0x520 PF: > { %s1972_s30 = sld [smem:[#allocation16_spill]]  ;;  %s1973_s18 = sld [smem:[#allocation9_spill]] }
 0x526   : > { %p1398_p6 = scmp.ge.s32.totalorder %s1972_s30, 2  ;;  %s1108_s5 = sand.u32 1, %s1973_s18  }
 0x527   : > { %s1109_s25 = scalar_lea.sflag [#allocation7], %s1108_s5 }
 0x528   : > { %p1395_p7 = pnand %p1398_p6, %p1706_p9 }
 0x52a   : > { %1542 = dma.done.wait (!%p1395_p7), %s1109_s25, 128  }
 0x52b   : > { %1544 = vsyncadd (!%p1395_p7), %s1109_s25, 4294967168  ;;  %s25_s28 = sadd.s32 1, %s1972_s30   ;;  %s1975_s21 = sld [smem:[#allocation10_spill]] }
 0x52c   : > { %p22_p8 = scmp.ge.s32.totalorder %s25_s28, 10   ;;  %s1976_s22 = sld [smem:[#allocation11_spill]] }
 0x52d   : > { %s1977_s23 = sld [smem:[#allocation21_spill]]  ;;  %s1978_s24 = sld [smem:[#allocation14_spill]] }
 0x52e   : > { %s1979_s25 = sld [smem:[#allocation15_spill]]  ;;  %s1980_s26 = sld [smem:[#allocation17_spill]] }
 0x52f   : > { %s1981_s27 = sld [smem:[#allocation19_spill]]  ;;  %24 = sbr.rel (!%p22_p8) target bundleno = 11 (0xb), region = 145 }
 0x536   :  { %1114 = vsyncpa [#allocation7], 1 }
 0x537   :  { %1116 = vsyncpa [#allocation7 + $0x1], 1 }

</bundles_post_ra>
